<compile_context>
chip_gen: v5e
topology: v5e:2x2
jax: 0.10.0
libtpu: 0.0.40
codegen_flags: <defaults>
</compile_context>

<pallas_src>
import functools

import jax
import jax.numpy as jnp
from jax import lax
from jax.experimental import pallas as pl
from jax.experimental.pallas import tpu as pltpu

BN_EPS = 1e-5


def _round_up(x, m):
    return (x + m - 1) // m * m


# ----------------------------------------------------------------------------
# In-kernel conv: 3x3 conv of a block of whole images as 3 accumulating MXU
# matmuls of row-shifted slab views against banded weight matrices.
# ----------------------------------------------------------------------------
def _conv_rows(x_ref, wband_ref, h):
    """x_ref: (BN, Hp, Kin) bf16 padded row-slab (rows 0..h+1 are real rows),
    wband_ref: (3, Kin, W*Cout) bf16.  Returns conv as (BN*h, W*Cout) f32."""
    bn, _, kin = x_ref.shape
    x = x_ref[...]
    acc = jnp.dot(x[:, 0:h, :].reshape(bn * h, kin), wband_ref[0],
                  preferred_element_type=jnp.float32)
    acc = acc + jnp.dot(x[:, 1:h + 1, :].reshape(bn * h, kin), wband_ref[1],
                        preferred_element_type=jnp.float32)
    acc = acc + jnp.dot(x[:, 2:h + 2, :].reshape(bn * h, kin), wband_ref[2],
                        preferred_element_type=jnp.float32)
    return acc


def _stats_kernel(h, x_ref, wband_ref, mean_ref, m2_ref):
    """Pass 1: conv recomputed in VMEM only; emit per-block per-lane mean and
    centered sum of squares (tiny HBM writes, no conv round-trip)."""
    acc = _conv_rows(x_ref, wband_ref, h)                 # (BN*h, WCout) f32
    rows = acc.shape[0]
    m = jnp.sum(acc, axis=0, keepdims=True) * (1.0 / rows)
    d = acc - m
    mean_ref[0] = m
    m2_ref[0] = jnp.sum(d * d, axis=0, keepdims=True)


def _conv_bn_relu_kernel(h, x_ref, wband_ref, scale_ref, shift_ref, out_ref):
    """Pass 2: recompute conv, fuse y = max(conv*scale + shift, 0), lane-dense."""
    acc = _conv_rows(x_ref, wband_ref, h)                 # (BN*h, WCout) f32
    y = jnp.maximum(acc * scale_ref[...] + shift_ref[...], 0.0)
    bn, _, wcout = out_ref.shape
    out_ref[...] = y.reshape(bn, h, wcout)


# ----------------------------------------------------------------------------
# Wrapper glue
# ----------------------------------------------------------------------------
def _banded_weights(w_oihw, W, kin_pad):
    """(Cout, Cin, 3, 3) -> (3, kin_pad, W*Cout) banded matrices, one per ky.

    band[ky][(w+kx)*Cin + ci, w*Cout + co] = w[co, ci, ky, kx]; rows beyond
    (W+2)*Cin are zero padding (free in the matmul)."""
    Cout, Cin, KH, KW = w_oihw.shape
    Wp = W + KW - 1
    w_t = jnp.transpose(w_oihw, (2, 3, 1, 0)).astype(jnp.float32)   # (3,3,Cin,Cout)
    bands = []
    for ky in range(KH):
        kmat = w_t[ky].reshape(KW * Cin, Cout)          # rows: kx*Cin + ci
        cols = []
        for w in range(W):
            top = w * Cin
            bot = (Wp - KW - w) * Cin
            cols.append(jnp.pad(kmat, ((top, bot), (0, 0))))
        band = jnp.stack(cols, axis=0)                  # (W, Wp*Cin, Cout)
        band = band.transpose(1, 0, 2).reshape(Wp * Cin, W * Cout)
        bands.append(band)
    wband = jnp.stack(bands, axis=0)                    # (3, Wp*Cin, W*Cout)
    return jnp.pad(wband, ((0, 0), (0, kin_pad - Wp * Cin), (0, 0)))


def _pick_batch_block(N, H, HP, KINP, WCOUT, budget_bytes=12 * 1024 * 1024):
    """Largest image-block BN dividing N whose working set fits the VMEM budget
    (bf16 slab + bf16 banded weights, double-buffered, f32 out tile + f32
    accumulator).  Prefer an even block count so both v7x cores stay busy."""
    def fits(bn):
        work = (2 * 2 * bn * HP * KINP          # bf16 x-slab, double-buffered
                + 2 * 2 * 3 * KINP * WCOUT      # bf16 banded weights, double-buffered
                + 2 * 4 * bn * H * WCOUT        # f32 output tile, double-buffered
                + 4 * bn * H * WCOUT)           # in-kernel f32 conv accumulator
        return work <= budget_bytes

    divs = [d for d in range(1, N + 1) if N % d == 0 and fits(d)]
    if not divs:
        return 1
    even = [d for d in divs if (N // d) % 2 == 0]
    return max(even) if even else max(divs)


def unit_forward(x_nchw, w_oihw, conv_bias, bn_gamma, bn_beta):
    """Forward of Unit. x_nchw: (N, Cin, H, W) float32 -> (N, Cout, H, W)."""
    # NOTE: conv_bias is intentionally ignored.  Under training-mode BatchNorm
    # (batch statistics, which is what nn.BatchNorm2d.forward uses) the bias
    # cancels exactly: the mean subtraction removes it and the variance is
    # unchanged, so the final output is bit-for-bit the same computation.
    del conv_bias
    N, Cin, H, W = x_nchw.shape
    Cout, _, KH, KW = w_oihw.shape
    Kin = (W + KW - 1) * Cin               # flattened padded-row width (lane = wp*Cin + ci)
    KINP = _round_up(Kin, 128)             # lane-pad K -> unmasked vld, clean MXU K pass
    WCOUT = W * Cout                       # lane-dense output layout (lane = w*Cout + co)
    HP = _round_up(H + 2, 8)               # sublane-pad slab rows

    # --- glue: NCHW -> padded NHWC row-slab, bf16 (single fused XLA pass) -----
    x = jnp.transpose(x_nchw, (0, 2, 3, 1)).astype(jnp.float32)     # NHWC
    xp = jnp.pad(x, ((0, 0), (1, 1), (1, 1), (0, 0)))               # (N, H+2, W+2, Cin)
    xrows = xp.reshape(N, H + 2, Kin)
    xrows = jnp.pad(xrows, ((0, 0), (0, HP - (H + 2)), (0, KINP - Kin)))
    xrows = xrows.astype(jnp.bfloat16)                              # MXU-native operands

    wband = _banded_weights(w_oihw, W, KINP).astype(jnp.bfloat16)   # (3, KINP, WCOUT)

    BN = _pick_batch_block(N, H, HP, KINP, WCOUT)
    NB = N // BN

    cparams = pltpu.CompilerParams(
        dimension_semantics=("parallel",),       # shards image-blocks across v7x's 2 TCs
        vmem_limit_bytes=32 * 1024 * 1024,
    )

    # --- pass 1: conv recomputed in VMEM -> per-block mean / centered M2 ------
    mean_b, m2_b = pl.pallas_call(
        functools.partial(_stats_kernel, H),
        grid=(NB,),
        in_specs=[
            pl.BlockSpec((BN, HP, KINP), lambda i: (i, 0, 0)),
            pl.BlockSpec((3, KINP, WCOUT), lambda i: (0, 0, 0)),
        ],
        out_specs=(
            pl.BlockSpec((1, 1, WCOUT), lambda i: (i, 0, 0)),
            pl.BlockSpec((1, 1, WCOUT), lambda i: (i, 0, 0)),
        ),
        out_shape=(
            jax.ShapeDtypeStruct((NB, 1, WCOUT), jnp.float32),
            jax.ShapeDtypeStruct((NB, 1, WCOUT), jnp.float32),
        ),
        compiler_params=cparams,
    )(xrows, wband)

    # --- tiny wrapper math: Chan-merge block stats, fold BN into scale/shift --
    n_per = BN * H                                     # rows per (block, w) group
    mg = mean_b.reshape(NB * W, Cout)
    m2g = m2_b.reshape(NB * W, Cout)
    mean = mg.mean(axis=0)                             # equal group counts
    m2 = m2g.sum(axis=0) + n_per * jnp.sum((mg - mean) ** 2, axis=0)
    var = jnp.maximum(m2 / (N * H * W), 0.0)           # biased var (BN training mode)
    scale = bn_gamma.astype(jnp.float32) * lax.rsqrt(var + BN_EPS)
    shift = bn_beta.astype(jnp.float32) - mean * scale
    scale_row = jnp.tile(scale, W).reshape(1, WCOUT)   # lane = w*Cout + co
    shift_row = jnp.tile(shift, W).reshape(1, WCOUT)

    # --- pass 2: recompute conv + fused BN + ReLU, write final output ---------
    out = pl.pallas_call(
        functools.partial(_conv_bn_relu_kernel, H),
        grid=(NB,),
        in_specs=[
            pl.BlockSpec((BN, HP, KINP), lambda i: (i, 0, 0)),
            pl.BlockSpec((3, KINP, WCOUT), lambda i: (0, 0, 0)),
            pl.BlockSpec((1, WCOUT), lambda i: (0, 0)),
            pl.BlockSpec((1, WCOUT), lambda i: (0, 0)),
        ],
        out_specs=pl.BlockSpec((BN, H, WCOUT), lambda i: (i, 0, 0)),
        out_shape=jax.ShapeDtypeStruct((N, H, WCOUT), jnp.float32),
        compiler_params=cparams,
    )(xrows, wband, scale_row, shift_row)

    # --- glue: back to NCHW ----------------------------------------------------
    return out.reshape(N, H, W, Cout).transpose(0, 3, 1, 2)


# ----------------------------------------------------------------------------
# Pure-JAX reference (matches the PyTorch module in training mode, f32 conv)
# ----------------------------------------------------------------------------
def unit_reference(x_nchw, w_oihw, conv_bias, bn_gamma, bn_beta):
    conv = lax.conv_general_dilated(
        x_nchw, w_oihw, window_strides=(1, 1), padding="SAME",
        dimension_numbers=("NCHW", "OIHW", "NCHW"))
    conv = conv + conv_bias.reshape(1, -1, 1, 1)
    mean = conv.mean(axis=(0, 2, 3), keepdims=True)
    var = conv.var(axis=(0, 2, 3), keepdims=True)                   # biased
    y = (conv - mean) / jnp.sqrt(var + BN_EPS)
    y = y * bn_gamma.reshape(1, -1, 1, 1) + bn_beta.reshape(1, -1, 1, 1)
    return jnp.maximum(y, 0.0)


if __name__ == "__main__":
    # Small shapes consistent with the module: batch=2, in_channels=4,
    # out_channels=8, spatial 16x16 (W*Cout = 128 -> lane-dense output).
    N, Cin, Cout, H, W = 2, 4, 8, 16, 16

    key = jax.random.PRNGKey(0)
    kx_, kw_, kb_, kg_, kbe_ = jax.random.split(key, 5)

    x = jax.random.normal(kx_, (N, Cin, H, W), dtype=jnp.float32)
    w = 0.1 * jax.random.normal(kw_, (Cout, Cin, 3, 3), dtype=jnp.float32)
    b = 0.1 * jax.random.normal(kb_, (Cout,), dtype=jnp.float32)
    gamma = 1.0 + 0.1 * jax.random.normal(kg_, (Cout,), dtype=jnp.float32)
    beta = 0.05 * jax.random.normal(kbe_, (Cout,), dtype=jnp.float32)

    out = jax.block_until_ready(unit_forward(x, w, b, gamma, beta))
    ref = jax.block_until_ready(unit_reference(x, w, b, gamma, beta))

    assert out.shape == (N, Cout, H, W)
    # Tolerance note: the kernel uses bf16 matmul operands (f32 accumulation),
    # so x/w are rounded to 8-bit mantissas (rel ~2^-9); after BN normalization
    # the per-element error is O(1e-3).  The reference stays full f32.
    assert jnp.allclose(out, ref, atol=2e-2, rtol=1e-2), "mismatch vs reference"

    print("KERNEL_OK")
</pallas_src>

<mosaic_0001>
module attributes {stable_mosaic.version = 11 : i64} {
  func.func @_stats_kernel(%arg0: i32, %arg1: memref<1x24x128xbf16, #tpu.memory_space<vmem>>, %arg2: memref<3x128x128xbf16, #tpu.memory_space<vmem>>, %arg3: memref<1x1x128xf32, #tpu.memory_space<vmem>>, %arg4: memref<1x1x128xf32, #tpu.memory_space<vmem>>) attributes {dimension_semantics = [#tpu.dimension_semantics<parallel>], iteration_bounds = array<i64: 2>, scalar_prefetch = 0 : i64, scratch_operands = 0 : i64, tpu.core_type = #tpu.core_type<tc>, window_params = [{transform_indices = @transform_0, window_bounds = array<i64: 1, 24, 128>}, {pipeline_mode = #tpu.pipeline_mode<synchronous>, transform_indices = @transform_1, window_bounds = array<i64: 3, 128, 128>}, {transform_indices = @transform_2, window_bounds = array<i64: 1, 1, 128>}, {transform_indices = @transform_3, window_bounds = array<i64: 1, 1, 128>}]} {
    %c0 = arith.constant 0 : index
    %c0_0 = arith.constant 0 : index
    %c0_1 = arith.constant 0 : index
    %0 = vector.load %arg1[%c0, %c0_0, %c0_1] : memref<1x24x128xbf16, #tpu.memory_space<vmem>>, vector<1x24x128xbf16>
    %1 = vector.extract_strided_slice %0 {offsets = [0, 0, 0], sizes = [1, 16, 128], strides = [1, 1, 1]} : vector<1x24x128xbf16> to vector<1x16x128xbf16>
    %2 = vector.shape_cast %1 : vector<1x16x128xbf16> to vector<16x128xbf16>
    %c0_2 = arith.constant 0 : index
    %c0_3 = arith.constant 0 : index
    %c0_4 = arith.constant 0 : index
    %3 = vector.load %arg2[%c0_2, %c0_3, %c0_4] : memref<3x128x128xbf16, #tpu.memory_space<vmem>>, vector<1x128x128xbf16>
    %4 = vector.shape_cast %3 : vector<1x128x128xbf16> to vector<128x128xbf16>
    %cst = arith.constant dense<0.000000e+00> : vector<16x128xf32>
    %5 = tpu.matmul %2, %4, %cst {dimension_numbers = #tpu.dot_dimension_numbers<[1], [0], [0], [1], [0, 0, 1, 1], [], []>} : vector<16x128xbf16>, vector<128x128xbf16>, vector<16x128xf32> -> vector<16x128xf32>
    %6 = vector.extract_strided_slice %0 {offsets = [0, 1, 0], sizes = [1, 16, 128], strides = [1, 1, 1]} : vector<1x24x128xbf16> to vector<1x16x128xbf16>
    %7 = vector.shape_cast %6 : vector<1x16x128xbf16> to vector<16x128xbf16>
    %c1 = arith.constant 1 : index
    %c0_5 = arith.constant 0 : index
    %c0_6 = arith.constant 0 : index
    %8 = vector.load %arg2[%c1, %c0_5, %c0_6] : memref<3x128x128xbf16, #tpu.memory_space<vmem>>, vector<1x128x128xbf16>
    %9 = vector.shape_cast %8 : vector<1x128x128xbf16> to vector<128x128xbf16>
    %cst_7 = arith.constant dense<0.000000e+00> : vector<16x128xf32>
    %10 = tpu.matmul %7, %9, %cst_7 {dimension_numbers = #tpu.dot_dimension_numbers<[1], [0], [0], [1], [0, 0, 1, 1], [], []>} : vector<16x128xbf16>, vector<128x128xbf16>, vector<16x128xf32> -> vector<16x128xf32>
    %11 = arith.addf %5, %10 : vector<16x128xf32>
    %12 = vector.extract_strided_slice %0 {offsets = [0, 2, 0], sizes = [1, 16, 128], strides = [1, 1, 1]} : vector<1x24x128xbf16> to vector<1x16x128xbf16>
    %13 = vector.shape_cast %12 : vector<1x16x128xbf16> to vector<16x128xbf16>
    %c2 = arith.constant 2 : index
    %c0_8 = arith.constant 0 : index
    %c0_9 = arith.constant 0 : index
    %14 = vector.load %arg2[%c2, %c0_8, %c0_9] : memref<3x128x128xbf16, #tpu.memory_space<vmem>>, vector<1x128x128xbf16>
    %15 = vector.shape_cast %14 : vector<1x128x128xbf16> to vector<128x128xbf16>
    %cst_10 = arith.constant dense<0.000000e+00> : vector<16x128xf32>
    %16 = tpu.matmul %13, %15, %cst_10 {dimension_numbers = #tpu.dot_dimension_numbers<[1], [0], [0], [1], [0, 0, 1, 1], [], []>} : vector<16x128xbf16>, vector<128x128xbf16>, vector<16x128xf32> -> vector<16x128xf32>
    %17 = arith.addf %11, %16 : vector<16x128xf32>
    %cst_11 = arith.constant dense<0.000000e+00> : vector<128xf32>
    %18 = vector.multi_reduction <add>, %17, %cst_11 [0] : vector<16x128xf32> to vector<128xf32>
    %19 = vector.shape_cast %18 : vector<128xf32> to vector<1x128xf32>
    %cst_12 = arith.constant 6.250000e-02 : f32
    %20 = vector.broadcast %cst_12 : f32 to vector<1x128xf32>
    %21 = arith.mulf %19, %20 : vector<1x128xf32>
    %22 = vector.broadcast %21 : vector<1x128xf32> to vector<16x128xf32>
    %23 = arith.subf %17, %22 : vector<16x128xf32>
    %c0_13 = arith.constant 0 : index
    %c0_14 = arith.constant 0 : index
    %c0_15 = arith.constant 0 : index
    %24 = vector.load %arg3[%c0_13, %c0_14, %c0_15] : memref<1x1x128xf32, #tpu.memory_space<vmem>>, vector<1x1x128xf32>
    %25 = vector.shape_cast %24 : vector<1x1x128xf32> to vector<1x128xf32>
    %26 = vector.shape_cast %21 : vector<1x128xf32> to vector<1x1x128xf32>
    tpu.vector_store %arg3[%c0_13, %c0_14, %c0_15], %26 {strides = array<i32>} : memref<1x1x128xf32, #tpu.memory_space<vmem>>, vector<1x1x128xf32>,
    %27 = arith.mulf %23, %23 : vector<16x128xf32>
    %cst_16 = arith.constant dense<0.000000e+00> : vector<128xf32>
    %28 = vector.multi_reduction <add>, %27, %cst_16 [0] : vector<16x128xf32> to vector<128xf32>
    %29 = vector.shape_cast %28 : vector<128xf32> to vector<1x128xf32>
    %c0_17 = arith.constant 0 : index
    %c0_18 = arith.constant 0 : index
    %c0_19 = arith.constant 0 : index
    %30 = vector.load %arg4[%c0_17, %c0_18, %c0_19] : memref<1x1x128xf32, #tpu.memory_space<vmem>>, vector<1x1x128xf32>
    %31 = vector.shape_cast %30 : vector<1x1x128xf32> to vector<1x128xf32>
    %32 = vector.shape_cast %29 : vector<1x128xf32> to vector<1x1x128xf32>
    tpu.vector_store %arg4[%c0_17, %c0_18, %c0_19], %32 {strides = array<i32>} : memref<1x1x128xf32, #tpu.memory_space<vmem>>, vector<1x1x128xf32>,
    return
  }
  func.func @transform_0(%arg0: i32) -> (i32, i32, i32) {
    %c0_i32 = arith.constant 0 : i32
    %c0_i32_0 = arith.constant 0 : i32
    %c0_i32_1 = arith.constant 0 : i32
    return %arg0, %c0_i32, %c0_i32_0 : i32, i32, i32
  }
  func.func @transform_1(%arg0: i32) -> (i32, i32, i32) {
    %c0_i32 = arith.constant 0 : i32
    %c0_i32_0 = arith.constant 0 : i32
    %c0_i32_1 = arith.constant 0 : i32
    %c0_i32_2 = arith.constant 0 : i32
    return %c0_i32, %c0_i32_0, %c0_i32_1 : i32, i32, i32
  }
  func.func @transform_2(%arg0: i32) -> (i32, i32, i32) {
    %c0_i32 = arith.constant 0 : i32
    %c0_i32_0 = arith.constant 0 : i32
    %c0_i32_1 = arith.constant 0 : i32
    return %arg0, %c0_i32, %c0_i32_0 : i32, i32, i32
  }
  func.func @transform_3(%arg0: i32) -> (i32, i32, i32) {
    %c0_i32 = arith.constant 0 : i32
    %c0_i32_0 = arith.constant 0 : i32
    %c0_i32_1 = arith.constant 0 : i32
    return %arg0, %c0_i32, %c0_i32_0 : i32, i32, i32
  }
}

</mosaic_0001>

<bundles_post_ra>
// kernel: tpu_custom_call.1
= control target key start
LH: loop header
LB: loop body
LE: loop exit
PB: predicated region body
PF: predicated region fallthrough
CT: control target
= control target key end

     0   :  { %9 = vsyncpa [#allocation3], 0  ;;  %s1194_s0 = inlined_call_operand.hbm [shape: bf16[2,24,128], index: 0, kind: input, shape index: {}]   ;;  %s1195_s1 = inlined_call_operand.hbm [shape: bf16[3,128,128], index: 1, kind: input, shape index: {}]   ;;  %s1196_s2 = inlined_call_operand.hbm [shape: f32[2,1,128], index: 2, kind: output, shape index: {0}]   ;;  %s1197_s3 = inlined_call_operand.hbm [shape: f32[2,1,128], index: 3, kind: output, shape index: {1}]  }
   0x1   :  { %11 = vsyncpa [#allocation3 + $0x1], 0 }
   0x2   :  { %12 = vsyncpa [#allocation6], 0 }
   0x3   :  { %13 = vsyncpa [#allocation4], 0 }
   0x4   :  { %15 = vsyncpa [#allocation4 + $0x1], 0 }
   0x5   :  { %16 = vsyncpa [#allocation9], 0 }
   0x6   :  { %18 = vsyncpa [#allocation9 + $0x1], 0  ;;  %s1029_s12 = smov 0   ;;  %s1031_s13 = smov 0  }
   0x7   :  { %s1033_s14 = smov 0   ;;  %s1035_s15 = smov 0  }
   0x8 LB: > { %s1050_s16 = sadd.s32 4294967295, %s1004_s15   ;;  %s641_s17 = sadd.s32 4294967294, %s1004_s15   ;;  %s1004_s15 = sphi %s1035_s15, %s1209_s15   ;;  %s1000_s14 = sphi %s1033_s14, %s1208_s14   ;;  %s996_s13 = sphi %s1031_s13, %s1207_s13   ;;  %s992_s12 = sphi %s1029_s12, %s1206_s12  }
   0x9   : > { %p44_p0 = scmp.ne.s32.totalorder %s996_s13, %s992_s12  ;;  %p45_p1 = scmp.eq.s32.totalorder %s1050_s16, 0 }
   0xa   : > { %p89_p2 = scmp.eq.s32.totalorder %s1050_s16, 1  ;;  %p95_p3 = scmp.eq.s32.totalorder %s641_s17, 1 }
   0xb   : > { %p1059_p4 = por %p45_p1, %p44_p0  ;;  %p642_p5 = scmp.ge.s32.totalorder %s1004_s15, 1 }
   0xc   : > { %p1064_p6 = por %p95_p3, %p44_p0  ;;  %p128_p7 = scmp.lt.s32.totalorder %s1004_s15, 3 }
   0xd   : > { %s139_s22 = sshll.u32 %s1195_s1, 4  ;;  %s1006_s24 = smov [#allocation5]   ;;  %s140_s22 = int_to_ptr.hbm [resolvable:$true] %s139_s22 }
   0xe   : > { %p1072_p8 = pnand %p642_p5, %p128_p7  ;;  %s141_s25 = sshll.u32 %s1006_s24, 4  ;;  %s142_s25 = int_to_ptr.vmem [resolvable:$true] %s141_s25 }
   0xf   : > { %s1082_s26 = sadd.s32 1, %s1004_s15   ;;  %s1198_s27 = smov 64  }
  0x10   : > { %p788_p9 = pneg %p1072_p8  ;;  %s1008_s28 = smov 4  }
  0x11   : > { %s28_s29 = ssub.s32 %s1004_s15, %s1082_s26  ;;  %s31_s30 = sadd.s32 1, %s1000_s14 }
  0x12   : > { %p789_p10 = pnand %p788_p9, %p45_p1  ;;  %p29_p12 = scmp.eq.s32.totalorder %s28_s29, 0 }
  0x13   : > { %p38_p13 = scmp.ne.s32.totalorder %s1000_s14, %s996_s13  ;;  %p39_p0 = scmp.eq.s32.totalorder %s1004_s15, 0 }
  0x14   : > { %791 = dma.hbm_to_vmem [thread:$0]  (!%p789_p10), %s140_s22, 3072, %s142_s25, [#allocation6], %s1198_s27, %s1198_s27, %s1008_s28  }
  0x15   : > { %p804_p3 = scmp.lt.s32.totalorder %s1004_s15, 2  ;;  %p40_p5 = por %p39_p0, %p38_p13 }
  0x16   : > { %s1095_s4 = scalar_select %p29_p12, %s1000_s14, %s31_s30  }
  0x17   : > { %p1099_p7 = por %p89_p2, %p38_p13  ;;  %s155_s6 = sand.u32 1, %s1000_s14  }
  0x18   : > { %s776_s7 = smul.u32 12, %s1004_s15  ;;  %p1108_p9 = pnand %p804_p3, %p40_p5 }
  0x19   : > { %s775_s8 = smul.u32 12, %s155_s6  ;;  %s156_s24 = scalar_lea.sflag [#allocation3], %s155_s6 }
  0x1a   : > { %s164_s11 = scalar_lea.hbm %s1194_s0, %s776_s7  ;;  %p876_p10 = pneg %p1108_p9 }
  0x1b   : > { %s165_s20 = sshll.u32 %s164_s11, 4  ;;  %s159_s21 = scalar_lea.vmem [#allocation2], %s775_s8  ;;  %s166_s20 = int_to_ptr.hbm [resolvable:$true] %s165_s20 }
  0x1c   : > { %s167_s22 = sshll.u32 %s159_s21, 4  ;;  %s872_s25 = sshra.s32 %s166_s20, 4  ;;  %s168_s22 = int_to_ptr.vmem [resolvable:$true] %s167_s22  ;;  %s873_s25 = int_to_ptr.hbm [resolvable:$true] %s872_s25 }
  0x1d   : > { %s874_s29 = scalar_lea.hbm %s873_s25, 12  ;;  %s879_s9 = scalar_lea.hbm %s1194_s0, 24 }
  0x1e   : > { %p875_p2 = scmp.ne.s32.totalorder %s873_s25, %s874_s29  ;;  %p880_p0 = scmp.lt.s32.totalorder %s873_s25, %s1194_s0 }
  0x1f   : > { %p881_p3 = scmp.lt.s32.totalorder %s879_s9, %s874_s29 }
  0x20   : > { %p877_p12 = pnand %p876_p10, %p875_p2 }
  0x21   : > { %p882_p5 = por %p881_p3, %p880_p0 }
  0x22   : > { %p878_p13 = pneg %p877_p12 }
  0x24   : > { %p883_p11 = pnand %p882_p5, %p878_p13 }
  0x26   : > { %886 = shalt.err (!%p883_p11)
}
  0x27   : > { %s1204_s6 = smov 64   ;;  %179 = sbr.rel (%p1072_p8) target bundleno = 261 (0x105), region = 28 }
  0x28   : > { %795 = dma.hbm_to_vmem [thread:$0]  (!%p1108_p9), %s166_s20, 192, %s168_s22, %s156_s24, %s1204_s6, %s1204_s6, %s1008_s28  }
  0x29   : > { %s1128_s8 = sand.u32 (!%p1072_p8), 1, %s996_s13  }
  0x2a   : > { %s777_s27 = smul.u32 (!%p1072_p8), 12, %s1128_s8  ;;  %s182_s11 = scalar_lea.sflag (!%p1072_p8), [#allocation3], %s1128_s8 }
  0x2c   : > { %s1132_s21 = scalar_lea.vmem [#allocation2], %s777_s27 }
  0x2d   : > { %975 = dma.done.wait (%p1059_p4), %s182_s11, 192  }
  0x2e   : > { %977 = vsyncadd (%p1059_p4), %s182_s11, 4294967104 }
  0x2f   : > { %979 = dma.done.wait (%p45_p1), [#allocation6], 3072  }
  0x30   : > { %981 = vsyncadd (%p45_p1), [#allocation6], 4294964224  ;;  %v766_v0 = vld [vmem:[#allocation5 + $0x78] sm:$0xff]  ;;  %v765_v3 = vld [vmem:[#allocation5 + $0x70] sm:$0xff]  ;;  %vm261_vm0 = vsmask.f32 7424  ;;  %s520_s28 = scalar_lea.hbm %s1196_s2, %s1050_s16 }
  0x31   : > { %v758_v1 = vld [vmem:[#allocation5 + $0x38] sm:$0xff]  ;;  %323 = vmatpush.bf16.msra.mxu0 %v766_v0  ;;  %v757_v4 = vld [vmem:[#allocation5 + $0x30] sm:$0xff]  ;;  %v764_v6 = vld [vmem:[#allocation5 + $0x68] sm:$0xff]  ;;  %vm417_vm1 = vcmask 1046528   ;;  %s210_s17 = scalar_lea.vmem [#allocation7], %s1128_s8  ;;  %s524_s22 = sshll.u32 %s520_s28, 4  ;;  %s525_s22 = int_to_ptr.hbm [resolvable:$true] %s524_s22 }
  0x32   : > { %v774_v2 = vld [vmem:[#allocation5 + $0xb8] sm:$0xff]  ;;  %386 = vmatpush.bf16.msra.mxu1 %v758_v1  ;;  %v773_v5 = vld [vmem:[#allocation5 + $0xb0] sm:$0xff]  ;;  %v756_v7 = vld [vmem:[#allocation5 + $0x28] sm:$0xff]  ;;  %s522_s20 = sshll.u32 %s210_s17, 4  ;;  %s508_s24 = scalar_lea.sflag [#allocation4], %s1128_s8  ;;  %s523_s20 = int_to_ptr.vmem [resolvable:$true] %s522_s20 }
  0x33   : > { %470 = vmatpush.bf16.msra.mxu2 %v774_v2  ;;  %v772_v8 = vld [vmem:[#allocation5 + $0xa8] sm:$0xff]  ;;  %v763_v9 = vld [vmem:[#allocation5 + $0x60] sm:$0xff]  ;;  %v219_v12 = vld [vmem:[%s1132_s21 + $0x8] sm:$0xf]  ;;  %s916_s25 = sshra.s32 %s525_s22, 4  ;;  %s922_s9 = scalar_lea.hbm %s1196_s2, 2  ;;  %s917_s25 = int_to_ptr.hbm [resolvable:$true] %s916_s25 }
  0x34   : > { %v755_v10 = vld [vmem:[#allocation5 + $0x20] sm:$0xff]  ;;  %v762_v13 = vld [vmem:[#allocation5 + $0x58] sm:$0xff]  ;;  %v258_v16 = vunpack.c.l.b16 %v219_v12  ;;  %v761_v18 = vld [vmem:[#allocation5 + $0x50] sm:$0xff]  ;;  %s918_s29 = scalar_lea.hbm %s917_s25, 1  ;;  %p923_p11 = scmp.lt.s32.totalorder %s917_s25, %s1196_s2 }
  0x35   : > { %324 = vmatpush.bf16.msra.mxu0 %v765_v3  ;;  %v771_v11 = vld [vmem:[#allocation5 + $0xa0] sm:$0xff]  ;;  %v754_v14 = vld [vmem:[#allocation5 + $0x18] sm:$0xff]  ;;  %v753_v19 = vld [vmem:[#allocation5 + $0x10] sm:$0xff]  ;;  %p919_p1 = scmp.ne.s32.totalorder %s917_s25, %s918_s29  ;;  %p924_p9 = scmp.lt.s32.totalorder %s922_s9, %s918_s29 }
  0x36   : > { %387 = vmatpush.bf16.msra.mxu1 %v757_v4  ;;  %v750_v15 = vld [vmem:[%s1132_s21] sm:$0xff]  ;;  %v260_v20 = vpack.c.b16 %v258_v16, %v258_v16  ;;  %v759_v29 = vld [vmem:[#allocation5 + $0x40] sm:$0xff] }
  0x37   : > { %471 = vmatpush.bf16.msra.mxu2 %v773_v5  ;;  %v770_v17 = vld [vmem:[#allocation5 + $0x98] sm:$0xff]  ;;  %v265_v21 = vshll.u32 %v750_v15, 16  ;;  %v769_v22 = vld [vmem:[#allocation5 + $0x90] sm:$0xff]  ;;  %v760_v23 = vld [vmem:[#allocation5 + $0x48] sm:$0xff]  ;;  %v263_v25 = vshrl.u32 %v750_v15, 16  ;;  %v418_v34 = vrot.slane %v750_v15, 1  ;;  %p920_p4 = pnand %p919_p1, %p1099_p7  ;;  %p925_p2 = por %p924_p9, %p923_p11 }
  0x38   : > { %v752_v24 = vld [vmem:[#allocation5 + $0x8] sm:$0xff]  ;;  %v270_v27 = vshll.u32 %v260_v20, 16  ;;  %v751_v30 = vld [vmem:[#allocation5] sm:$0xff]  ;;  %v419_v35 = vrot.slane %v260_v20, 1 }
  0x39   : > { %325 = vmatpush.bf16.msra.mxu0 %v764_v6  ;;  %v267_v26 = vrot.slane %v265_v21, 1  ;;  %v768_v28 = vld [vmem:[#allocation5 + $0x88] sm:$0xff]  ;;  %v767_v33 = vld [vmem:[#allocation5 + $0x80] sm:$0xff]  ;;  %p921_p8 = pneg %p920_p4 }
  0x3a   : > { %388 = vmatpush.bf16.msra.mxu1 %v756_v7  ;;  %v272_v32 = vrot.slane %v270_v27, 1  ;;  %v420_v37 = vsel %vm417_vm1, %v418_v34, %v419_v35 }
  0x3b   : > { %472 = vmatpush.bf16.msra.mxu2 %v772_v8  ;;  %v268_v31 = vor.u32 %v267_v26, %v263_v25  ;;  %p926_p10 = pnand %p925_p2, %p921_p8 }
  0x3d   : > { %326 = vmatpush.bf16.msra.mxu0 %v763_v9  ;;  %v273_v36 = vsel %vm261_vm0, %v268_v31, %v272_v32 }
  0x3e   : > { %389 = vmatpush.bf16.msra.mxu1 %v755_v10 }
  0x3f   : > { %473 = vmatpush.bf16.msra.mxu2 %v771_v11 }
  0x41   : > { %327 = vmatpush.bf16.msra.mxu0 %v762_v13 }
  0x42   : > { %390 = vmatpush.bf16.msra.mxu1 %v754_v14 }
  0x43   : > { %474 = vmatpush.bf16.msra.mxu2 %v770_v17 }
  0x45   : > { %328 = vmatpush.bf16.msra.mxu0 %v761_v18 }
  0x46   : > { %391 = vmatpush.bf16.msra.mxu1 %v753_v19 }
  0x47   : > { %475 = vmatpush.bf16.msra.mxu2 %v769_v22 }
  0x49   : > { %329 = vmatpush.bf16.msra.mxu0 %v760_v23 }
  0x4a   : > { %392 = vmatpush.bf16.msra.mxu1 %v752_v24 }
  0x4b   : > { %476 = vmatpush.bf16.msra.mxu2 %v768_v28 }
  0x4d   : > { %330 = vmatpush.bf16.msra.mxu0 %v759_v29 }
  0x4e   : > { %393 = vmatpush.bf16.msra.mxu1 %v751_v30 }
  0x4f   : > { %477 = vmatpush.bf16.msra.mxu2 %v767_v33 }
  0x50   : > { %331 = vmatmul.bf16.vlgmr.msra.gmra.mxu0 %v273_v36 }
  0x51   : > { %394 = vmatmul.bf16.vlgmr.msra.gmra.mxu1 %v750_v15 }
  0x52   : > { %478 = vmatmul.bf16.vlgmr.msra.gmra.mxu2 %v420_v37 }
  0xcd   : > { %v332_v38 = vpop.f32.mrf.mxu0 }
  0xce   : > { %v395_v39 = vpop.f32.mrf.mxu1 }
  0xcf   : > { %v396_v43 = vadd.f32 %v395_v39, %v332_v38 }
  0xd5   : > { %v479_v40 = vpop.f32.mrf.mxu2  ;;  %v334_v41 = vpop.f32.mrf.mxu0 }
  0xd6   : > { %v397_v42 = vpop.f32.mrf.mxu1  ;;  %v484_v46 = vadd.f32 %v479_v40, %v396_v43 }
  0xd7   : > { %v398_v44 = vadd.f32 %v397_v42, %v334_v41 }
  0xdd   : > { %v481_v45 = vpop.f32.mrf.mxu2 }
  0xde   : > { %v485_v47 = vadd.f32 %v481_v45, %v398_v44 }
  0xe0   : > { %v486_v48 = vadd.f32 %v485_v47, %v484_v46 }
  0xe2   : > { %v487_v49 = vrot.slane %v486_v48, 4 }
  0xe4   : > { %v488_v50 = vadd.f32 %v487_v49, %v486_v48 }
  0xe6   : > { %v489_v51 = vrot.slane %v488_v50, 2 }
  0xe8   : > { %v490_v52 = vadd.f32 %v489_v51, %v488_v50 }
  0xea   : > { %v491_v53 = vrot.slane %v490_v52, 1 }
  0xec   : > { %v492_v54 = vadd.f32 %v491_v53, %v490_v52 }
  0xee   : > { %v493_v55 = vmul.f32 0.0625, %v492_v54 }
  0xf0   : > { %v494_v56 = vsub.f32 %v484_v46, %v493_v55  ;;  %v495_v57 = vsub.f32 %v485_v47, %v493_v55  ;;  %496 = vst [vmem:[%s210_s17] sm:$0x1] %v493_v55 }
  0xf1   : > { %929 = shalt.err (!%p926_p10)
}
  0xf2   : > { %784 = dma.vmem_to_hbm [thread:$0]  (%p1099_p7), %s523_s20, 16, %s525_s22, %s508_s24   ;;  %v497_v58 = vmul.f32 %v494_v56, %v494_v56  ;;  %v498_v59 = vmul.f32 %v495_v57, %v495_v57 }
  0xf3   : > { %s533_s21 = scalar_lea.hbm %s1197_s3, %s1050_s16  ;;  %s216_s18 = scalar_lea.vmem [#allocation8], %s1128_s8 }
  0xf4   : > { %v499_v60 = vadd.f32 %v498_v59, %v497_v58  ;;  %s535_s23 = sshll.u32 %s216_s18, 4  ;;  %s537_s28 = sshll.u32 %s533_s21, 4  ;;  %s536_s23 = int_to_ptr.vmem [resolvable:$true] %s535_s23  ;;  %s538_s28 = int_to_ptr.hbm [resolvable:$true] %s537_s28 }
  0xf5   : > { %s512_s17 = scalar_lea.sflag [#allocation9], %s1128_s8  ;;  %s944_s20 = sshra.s32 %s538_s28, 4  ;;  %s945_s20 = int_to_ptr.hbm [resolvable:$true] %s944_s20 }
  0xf6   : > { %v500_v61 = vrot.slane %v499_v60, 4  ;;  %s946_s22 = scalar_lea.hbm %s945_s20, 1  ;;  %s950_s16 = scalar_lea.hbm %s1197_s3, 2 }
  0xf7   : > { %p947_p12 = scmp.ne.s32.totalorder %s945_s20, %s946_s22  ;;  %p951_p3 = scmp.lt.s32.totalorder %s945_s20, %s1197_s3 }
  0xf8   : > { %v501_v62 = vadd.f32 %v500_v61, %v499_v60  ;;  %p952_p5 = scmp.lt.s32.totalorder %s950_s16, %s946_s22 }
  0xf9   : > { %p948_p13 = pnand %p947_p12, %p1099_p7 }
  0xfa   : > { %v502_v63 = vrot.slane %v501_v62, 2  ;;  %p953_p1 = por %p952_p5, %p951_p3 }
  0xfb   : > { %p949_p0 = pneg %p948_p13 }
  0xfc   : > { %v503_v0 = vadd.f32 %v502_v63, %v501_v62 }
  0xfd   : > { %p954_p4 = pnand %p953_p1, %p949_p0 }
  0xfe   : > { %v504_v1 = vrot.slane %v503_v0, 1 }
 0x100   : > { %v505_v2 = vadd.f32 %v504_v1, %v503_v0 }
 0x102   : > { %506 = vst [vmem:[%s216_s18] sm:$0x1] %v505_v2 }
 0x103   : > { %957 = shalt.err (!%p954_p4)
}
 0x104   : > { %785 = dma.vmem_to_hbm [thread:$0]  (%p1099_p7), %s536_s23, 16, %s538_s28, %s512_s17  }
 0x105 PF: > { %s549_s8 = sand.u32 1, %s992_s12   ;;  %p1205_p8 = scmp.ge.s32.totalorder %s1004_s15, 2 }
 0x106   : > { %s550_s7 = scalar_lea.sflag [#allocation4], %s549_s8 }
 0x107   : > { %p797_p11 = pnand %p1205_p8, %p1064_p6 }
 0x109   : > { %p798_p9 = pneg %p797_p11 }
 0x10b   : > { %983 = dma.done.wait (%p798_p9), %s550_s7, 16  }
 0x10c   : > { %985 = vsyncadd (%p798_p9), %s550_s7, 4294967280  ;;  %s559_s9 = scalar_lea.sflag [#allocation9], %s549_s8 }
 0x10d   : > { %987 = dma.done.wait (%p798_p9), %s559_s9, 16  }
 0x10e   : > { %989 = vsyncadd (%p798_p9), %s559_s9, 4294967280  ;;  %p21_p7 = scmp.ge.s32.totalorder %s1082_s26, 4   ;;  %s1206_s12 = smov %s996_s13 }
 0x10f   : > { %s1207_s13 = smov %s1000_s14  ;;  %s1208_s14 = smov %s1095_s4 }
 0x110   : > { %s1209_s15 = smov %s1082_s26  ;;  %23 = sbr.rel (!%p21_p7) target bundleno = 8 (0x8), region = 96 }
 0x115   :  { %564 = vsyncpa [#allocation3], 1 }
 0x116   :  { %566 = vsyncpa [#allocation3 + $0x1], 1 }
 0x117   :  { %567 = vsyncpa [#allocation6], 1 }
 0x118   :  { %568 = vsyncpa [#allocation4], 1 }
 0x119   :  { %570 = vsyncpa [#allocation4 + $0x1], 1 }
 0x11a   :  { %571 = vsyncpa [#allocation9], 1 }
 0x11b   :  { %573 = vsyncpa [#allocation9 + $0x1], 1 }

</bundles_post_ra>
